<compile_context>
chip_gen: v6e
topology: v6e:2x2x1
jax: 0.10.0
libtpu: 0.0.40
codegen_flags: <defaults>
</compile_context>

<pallas_src>
import functools

import jax
import jax.numpy as jnp
from jax.experimental import pallas as pl
from jax.experimental.pallas import tpu as pltpu

_NEG = -1e30   # effectively -inf for the padded action lanes
_P = 128       # lane width
_BIAS_ROWS = 8  # bias section size (keeps the weight sections sublane-aligned)


def _round_up(v, m):
    return ((v + m - 1) // m) * m


def actor_net_kernel(x_ref, slab_ref, out_ref, *, k1, k2):
    # Static, sublane-aligned row offsets into the packed slab.
    w1_off = _BIAS_ROWS
    w2_off = w1_off + k1
    w3_off = w2_off + k2

    x0 = x_ref[...]                                               # (1, k1)

    # fc1 + relu.  W1 cols >= hidden_size and b1 lanes >= hidden_size are 0,
    # so the padded lanes of h are exactly 0 after the relu.
    h = jnp.dot(x0, slab_ref[pl.ds(w1_off, k1), :],
                preferred_element_type=jnp.float32) + slab_ref[0:1, :]
    h = jnp.maximum(h, 0.0)                                       # (1, P)

    # fc2 + relu — contract only the first k2 lanes (lanes [hidden, k2) are 0).
    h = jnp.dot(h[:, :k2], slab_ref[pl.ds(w2_off, k2), :],
                preferred_element_type=jnp.float32) + slab_ref[1:2, :]
    h = jnp.maximum(h, 0.0)

    # fc3 — padded action lanes get a ~-inf bias so they vanish in the softmax.
    logits = jnp.dot(h[:, :k2], slab_ref[pl.ds(w3_off, k2), :],
                     preferred_element_type=jnp.float32) + slab_ref[2:3, :]

    # Numerically-stable log_softmax over the full lane-dense row.
    m = jnp.max(logits, axis=-1, keepdims=True)
    shifted = logits - m
    lse = jnp.log(jnp.sum(jnp.exp(shifted), axis=-1, keepdims=True))
    out_ref[...] = shifted - lse                                  # (1, P), unmasked store


def pack_params(params, input_size, hidden_size, n_action):
    """Pack (w1,b1,w2,b2,w3,b3) into one lane-dense (rows, 128) slab (done once)."""
    assert hidden_size <= _P and n_action <= _P and input_size <= _P
    w1, b1, w2, b2, w3, b3 = params
    k1 = _round_up(input_size, 8)
    k2 = _round_up(hidden_size, 8)
    rows = _round_up(_BIAS_ROWS + k1 + 2 * k2, 8)

    slab = jnp.zeros((rows, _P), jnp.float32)

    # Bias section (rows 0..2).
    slab = slab.at[0, :hidden_size].set(b1.reshape(-1))
    slab = slab.at[1, :hidden_size].set(b2.reshape(-1))
    slab = slab.at[2, :].set(_NEG)                     # kill padded action lanes
    slab = slab.at[2, :n_action].set(b3.reshape(-1))

    # Weight sections (PyTorch W^T layout: fan_in x fan_out), K padded to 8 only.
    w1_off = _BIAS_ROWS
    w2_off = w1_off + k1
    w3_off = w2_off + k2
    slab = slab.at[w1_off:w1_off + input_size, :hidden_size].set(w1)
    slab = slab.at[w2_off:w2_off + hidden_size, :hidden_size].set(w2)
    slab = slab.at[w3_off:w3_off + hidden_size, :n_action].set(w3)
    return slab


@functools.partial(jax.jit,
                   static_argnames=("input_size", "hidden_size", "n_action"))
def actor_net_forward(x, slab, *, input_size, hidden_size, n_action):
    k1 = _round_up(input_size, 8)
    k2 = _round_up(hidden_size, 8)

    # Reference only uses fc3(...)[0] -> never DMA the other batch rows.
    x0 = x[0:1, :]
    if input_size != k1:                               # keep sublane-clean K
        x0 = jnp.pad(x0, ((0, 0), (0, k1 - input_size)))

    out_padded = pl.pallas_call(
        functools.partial(actor_net_kernel, k1=k1, k2=k2),
        out_shape=jax.ShapeDtypeStruct((1, _P), jnp.float32),
        in_specs=[pl.BlockSpec(memory_space=pltpu.VMEM)] * 2,
        out_specs=pl.BlockSpec(memory_space=pltpu.VMEM),
    )(x0, slab)
    return out_padded[0, :n_action]                    # (n_action,)


def init_params(key, input_size, hidden_size, n_action):
    """Deterministic PyTorch-Linear-style init: U(-1/sqrt(fan_in), 1/sqrt(fan_in))."""
    ks = jax.random.split(key, 6)

    def layer(kw, kb, fan_in, fan_out):
        bound = 1.0 / jnp.sqrt(jnp.float32(fan_in))
        w = jax.random.uniform(kw, (fan_in, fan_out), jnp.float32, -bound, bound)
        b = jax.random.uniform(kb, (1, fan_out), jnp.float32, -bound, bound)
        return w, b

    w1, b1 = layer(ks[0], ks[1], input_size, hidden_size)
    w2, b2 = layer(ks[2], ks[3], hidden_size, hidden_size)
    w3, b3 = layer(ks[4], ks[5], hidden_size, n_action)
    return (w1, b1, w2, b2, w3, b3)


def actor_net_reference(x, params):
    w1, b1, w2, b2, w3, b3 = params
    h1 = jnp.maximum(x @ w1 + b1, 0.0)
    h2 = jnp.maximum(h1 @ w2 + b2, 0.0)
    logits = (h2 @ w3 + b3)[0]
    return jax.nn.log_softmax(logits)


if __name__ == "__main__":
    batch, input_size, hidden_size, n_action = 2, 16, 32, 8

    key = jax.random.PRNGKey(0)
    k_x, k_p = jax.random.split(key)
    x = jax.random.normal(k_x, (batch, input_size), jnp.float32)
    params = init_params(k_p, input_size, hidden_size, n_action)

    # One-time packing (reused across every actor evaluation).
    slab = pack_params(params, input_size, hidden_size, n_action)

    out = actor_net_forward(x, slab, input_size=input_size,
                            hidden_size=hidden_size, n_action=n_action)
    out = jax.block_until_ready(out)

    ref = actor_net_reference(x, params)
    assert out.shape == (n_action,)
    assert jnp.allclose(out, ref, atol=1e-5, rtol=1e-5), "mismatch vs reference"

    print("KERNEL_OK")
</pallas_src>

<mosaic_0001>
module attributes {stable_mosaic.version = 11 : i64} {
  func.func @actor_net_kernel(%arg0: memref<1x16xf32, #tpu.memory_space<vmem>>, %arg1: memref<88x128xf32, #tpu.memory_space<vmem>>, %arg2: memref<1x128xf32, #tpu.memory_space<vmem>>) attributes {dimension_semantics = [], scalar_prefetch = 0 : i64, scratch_operands = 0 : i64, tpu.core_type = #tpu.core_type<tc>} {
    %c0 = arith.constant 0 : index
    %c0_0 = arith.constant 0 : index
    %0 = vector.load %arg0[%c0, %c0_0] : memref<1x16xf32, #tpu.memory_space<vmem>>, vector<1x16xf32>
    %c8 = arith.constant 8 : index
    %c0_1 = arith.constant 0 : index
    %1 = vector.load %arg1[%c8, %c0_1] : memref<88x128xf32, #tpu.memory_space<vmem>>, vector<16x128xf32>
    %cst = arith.constant dense<0.000000e+00> : vector<1x128xf32>
    %2 = tpu.matmul %0, %1, %cst {dimension_numbers = #tpu.dot_dimension_numbers<[1], [0], [0], [1], [0, 0, 1, 1], [], []>} : vector<1x16xf32>, vector<16x128xf32>, vector<1x128xf32> -> vector<1x128xf32>
    %c0_2 = arith.constant 0 : index
    %c0_3 = arith.constant 0 : index
    %3 = vector.load %arg1[%c0_2, %c0_3] : memref<88x128xf32, #tpu.memory_space<vmem>>, vector<1x128xf32>
    %4 = arith.addf %2, %3 : vector<1x128xf32>
    %cst_4 = arith.constant 0.000000e+00 : f32
    %5 = vector.broadcast %cst_4 : f32 to vector<1x128xf32>
    %6 = arith.maximumf %4, %5 : vector<1x128xf32>
    %7 = vector.extract_strided_slice %6 {offsets = [0, 0], sizes = [1, 32], strides = [1, 1]} : vector<1x128xf32> to vector<1x32xf32>
    %c24 = arith.constant 24 : index
    %c0_5 = arith.constant 0 : index
    %8 = vector.load %arg1[%c24, %c0_5] : memref<88x128xf32, #tpu.memory_space<vmem>>, vector<32x128xf32>
    %cst_6 = arith.constant dense<0.000000e+00> : vector<1x128xf32>
    %9 = tpu.matmul %7, %8, %cst_6 {dimension_numbers = #tpu.dot_dimension_numbers<[1], [0], [0], [1], [0, 0, 1, 1], [], []>} : vector<1x32xf32>, vector<32x128xf32>, vector<1x128xf32> -> vector<1x128xf32>
    %c1 = arith.constant 1 : index
    %c0_7 = arith.constant 0 : index
    %10 = vector.load %arg1[%c1, %c0_7] : memref<88x128xf32, #tpu.memory_space<vmem>>, vector<1x128xf32>
    %11 = arith.addf %9, %10 : vector<1x128xf32>
    %cst_8 = arith.constant 0.000000e+00 : f32
    %12 = vector.broadcast %cst_8 : f32 to vector<1x128xf32>
    %13 = arith.maximumf %11, %12 : vector<1x128xf32>
    %14 = vector.extract_strided_slice %13 {offsets = [0, 0], sizes = [1, 32], strides = [1, 1]} : vector<1x128xf32> to vector<1x32xf32>
    %c56 = arith.constant 56 : index
    %c0_9 = arith.constant 0 : index
    %15 = vector.load %arg1[%c56, %c0_9] : memref<88x128xf32, #tpu.memory_space<vmem>>, vector<32x128xf32>
    %cst_10 = arith.constant dense<0.000000e+00> : vector<1x128xf32>
    %16 = tpu.matmul %14, %15, %cst_10 {dimension_numbers = #tpu.dot_dimension_numbers<[1], [0], [0], [1], [0, 0, 1, 1], [], []>} : vector<1x32xf32>, vector<32x128xf32>, vector<1x128xf32> -> vector<1x128xf32>
    %c2 = arith.constant 2 : index
    %c0_11 = arith.constant 0 : index
    %17 = vector.load %arg1[%c2, %c0_11] : memref<88x128xf32, #tpu.memory_space<vmem>>, vector<1x128xf32>
    %18 = arith.addf %16, %17 : vector<1x128xf32>
    %cst_12 = arith.constant dense<0xFF800000> : vector<1xf32>
    %19 = vector.multi_reduction <maximumf>, %18, %cst_12 [1] : vector<1x128xf32> to vector<1xf32>
    %20 = vector.shape_cast %19 : vector<1xf32> to vector<1x1xf32>
    %21 = vector.broadcast %20 : vector<1x1xf32> to vector<1x128xf32>
    %22 = arith.subf %18, %21 : vector<1x128xf32>
    %23 = math.exp %22 : vector<1x128xf32>
    %cst_13 = arith.constant dense<0.000000e+00> : vector<1xf32>
    %24 = vector.multi_reduction <add>, %23, %cst_13 [1] : vector<1x128xf32> to vector<1xf32>
    %25 = vector.shape_cast %24 : vector<1xf32> to vector<1x1xf32>
    %26 = math.log %25 : vector<1x1xf32>
    %27 = vector.broadcast %26 : vector<1x1xf32> to vector<1x128xf32>
    %28 = arith.subf %22, %27 : vector<1x128xf32>
    %c0_14 = arith.constant 0 : index
    %c0_15 = arith.constant 0 : index
    %29 = vector.load %arg2[%c0_14, %c0_15] : memref<1x128xf32, #tpu.memory_space<vmem>>, vector<1x128xf32>
    tpu.vector_store %arg2[%c0_14, %c0_15], %28 {strides = array<i32>} : memref<1x128xf32, #tpu.memory_space<vmem>>, vector<1x128xf32>,
    return
  }
}

</mosaic_0001>

<bundles_post_ra>
// kernel: actor_net_forward.1
= control target key start
LH: loop header
LB: loop body
LE: loop exit
PB: predicated region body
PF: predicated region fallthrough
CT: control target
= control target key end

     0   :  { %7 = vsyncpa [#allocation3], 0  ;;  %s357_s9 = smov [#allocation2]   ;;  %s391_s0 = inlined_call_operand.vmem [shape: f32[1,16], index: 0, kind: input, shape index: {}]   ;;  %s392_s1 = inlined_call_operand.hbm [shape: f32[88,128], index: 1, kind: input, shape index: {}]   ;;  %s393_s2 = inlined_call_operand.vmem [shape: f32[1,128], index: 2, kind: output, shape index: {}]  }
   0x1   :  { %s15_s10 = sshll.u32 %s357_s9, 4  ;;  %s16_s10 = int_to_ptr.vmem [resolvable:$true] %s15_s10 }
   0x2   :  { %s343_s11 = scalar_lea.vmem %s16_s10, 1408  ;;  %p348_p1 = scmp.lt.s32.totalorder %s16_s10, %s16_s10 }
   0x3   :  { %p344_p0 = scmp.ne.s32.totalorder %s16_s10, %s343_s11  ;;  %p349_p2 = scmp.lt.s32.totalorder %s343_s11, %s343_s11 }
   0x5   :  { %p350_p3 = por %p349_p2, %p348_p1 }
   0x7   :  { %p351_p4 = pnand %p350_p3, %p344_p0 }
   0x9   :  { %354 = shalt.err (!%p351_p4)
}
   0xa   :  { %s358_s12 = smov 128   ;;  %s359_s13 = smov 8  }
   0xb   :  { %21 = dma.hbm_to_vmem [thread:$0]  %s392_s1, 1408, %s16_s10, [#allocation3], %s358_s12, %s358_s12, %s359_s13  }
   0xc   :  { %355 = dma.done.wait [#allocation3], 1408  }
   0xd   :  { %356 = vsyncadd [#allocation3], 4294965888  ;;  %v360_v0 = vmov 0.0   ;;  %vm361_vm0 = vmmov 0   ;;  %v27_v1 = vld [vmem:[#allocation2 + $0x10] sm:$0xff]  ;;  %v26_v2 = vld [vmem:[#allocation2 + $0x8] sm:$0xff] }
   0xe   :  { %297 = vmatprep.subr.mxu0 %v360_v0  ;;  %301 = vmatprep.mubr.msk.f32.mxu0 %vm361_vm0, %v360_v0  ;;  %v25_v3 = vld [vmem:[%s391_s0] sm:$0x1]  ;;  %vm29_vm1 = vcmask 130048   ;;  %v107_v4 = vld [vmem:[#allocation2 + $0x30] sm:$0xff]  ;;  %v106_v5 = vld [vmem:[#allocation2 + $0x28] sm:$0xff]  ;;  %vm109_vm2 = vcmask 261120  }
   0xf   :  { %304 = vmatprep.subr.mxu1 %v360_v0  ;;  %312 = vmatprep.mubr.msk.f32.mxu1 %vm361_vm0, %v360_v0  ;;  %v105_v6 = vld [vmem:[#allocation2 + $0x20] sm:$0xff]  ;;  %v104_v7 = vld [vmem:[#allocation2 + $0x18] sm:$0xff]  ;;  %v187_v8 = vld [vmem:[#allocation2 + $0x50] sm:$0xff]  ;;  %vm262_vm3 = vcmask 1040384  }
  0x10   :  { %298 = vmatpush3.msra.mxu0 %v27_v1  ;;  %305 = vmatpush3.msra.mxu1 %v107_v4  ;;  %v28_v9 = vld [vmem:[#allocation2] sm:$0x1]  ;;  %v186_v14 = vld [vmem:[#allocation2 + $0x48] sm:$0xff]  ;;  %v184_v16 = vld [vmem:[#allocation2 + $0x38] sm:$0xff] }
  0x11   :  { %299 = vmatprep.subr.mxu0 %v360_v0  ;;  %306 = vmatprep.subr.mxu1 %v360_v0  ;;  %v185_v15 = vld [vmem:[#allocation2 + $0x40] sm:$0xff] }
  0x12   :  { %300 = vmatpush3.msra.mxu0 %v26_v2  ;;  %307 = vmatpush3.msra.mxu1 %v106_v5  ;;  %v108_v17 = vld [vmem:[#allocation2 + $0x1] sm:$0x1]  ;;  %v188_v22 = vld [vmem:[#allocation2 + $0x2] sm:$0x1] }
  0x13   :  { %302 = vmatmul.mubr.msk.f32.vlgmr.msra.gmra.mxu0 %vm29_vm1, %v25_v3  ;;  %315 = vmatprep.subr.mxu0 %v360_v0 }
  0x14   :  { %323 = vmatprep.mubr.msk.f32.mxu0 %vm361_vm0, %v360_v0  ;;  %308 = vmatprep.subr.mxu1 %v360_v0 }
  0x15   :  { %309 = vmatpush3.msra.mxu1 %v105_v6  ;;  %316 = vmatpush3.msra.mxu0 %v187_v8 }
  0x16   :  { %310 = vmatprep.subr.mxu1 %v360_v0  ;;  %317 = vmatprep.subr.mxu0 %v360_v0 }
  0x17   :  { %311 = vmatpush3.msra.mxu1 %v104_v7  ;;  %318 = vmatpush3.msra.mxu0 %v186_v14 }
  0x18   :  { %319 = vmatprep.subr.mxu0 %v360_v0 }
  0x19   :  { %320 = vmatpush3.msra.mxu0 %v185_v15 }
  0x1a   :  { %321 = vmatprep.subr.mxu0 %v360_v0 }
  0x1b   :  { %322 = vmatpush3.msra.mxu0 %v184_v16 }
  0xd3   :  { %v99_v10 = vpop.f32.mrf.mxu0 }
  0xd4   :  { %v100_v11 = vadd.f32 %v99_v10, %v28_v9 }
  0xd5   :  { %v303_v12 = vpop.f32.mrf.mxu0 }
  0xd6   :  { %v103_v13 = vmax.f32 %v100_v11, 0.0 }
  0xd8   :  { %313 = vmatmul.mubr.msk.f32.vlgmr.msra.gmra.mxu1 %vm109_vm2, %v103_v13 }
 0x198   :  { %v179_v18 = vpop.f32.mrf.mxu1 }
 0x199   :  { %v180_v19 = vadd.f32 %v179_v18, %v108_v17 }
 0x19a   :  { %v314_v20 = vpop.f32.mrf.mxu1 }
 0x19b   :  { %v183_v21 = vmax.f32 %v180_v19, 0.0 }
 0x19d   :  { %324 = vmatmul.mubr.msk.f32.vlgmr.msra.gmra.mxu0 %vm109_vm2, %v183_v21 }
 0x25d   :  { %v258_v23 = vpop.f32.mrf.mxu0 }
 0x25e   :  { %v259_v24 = vadd.f32 %v258_v23, %v188_v22 }
 0x25f   :  { %v325_v25 = vpop.f32.mrf.mxu0 }
 0x260   :  { %v263_v26 = vsel %vm262_vm3, %v259_v24, -inf }
 0x261   :  { %264 = vmax.xlane.f32.xlu0 %v263_v26 }
 0x2ea   :  { %v265_v27 = vpop.xlane.xlu0 %264 }
 0x2eb   :  { %v266_v28 = vsub.f32 %v259_v24, %v265_v27 }
 0x2ed   :  { %v267_v29 = vmul.f32 1.442695, %v266_v28 }
 0x2ef   :  { %331 = vpow2.f32 %v267_v29 }
 0x2fc   :  { %v332_v30 = vpop.eup %331 }
 0x2fd   :  { %v269_v31 = vsel %vm262_vm3, %v332_v30, 0.0 }
 0x2fe   :  { %270 = vadd.xlane.f32.xlu0 %v269_v31 }
 0x387   :  { %v271_v32 = vpop.xlane.xlu0 %270 }
 0x388   :  { %333 = vlog2.f32 %v271_v32 }
 0x395   :  { %v334_v33 = vpop.eup %333 }
 0x396   :  { %v273_v34 = vmul.f32 0.6931472, %v334_v33 }
 0x398   :  { %v274_v35 = vsub.f32 %v266_v28, %v273_v34 }
 0x39a   :  { %275 = vst [vmem:[%s393_s2] sm:$0x1] %v274_v35 }
 0x39b   :  { %280 = vsyncpa [#allocation3], 1 }

</bundles_post_ra>
